<compile_context>
chip_gen: v7x
topology: tpu7x:2x2x1
jax: 0.10.0
libtpu: 0.0.40
codegen_flags: <defaults>
</compile_context>

<pallas_src>
import jax
import jax.numpy as jnp
from jax import lax
from jax.experimental import pallas as pl
from jax.experimental.pallas import tpu as pltpu


def _make_embed_kernel(TB):
    def _embed_kernel(patch_ref, w_ref, pos_ref, out_ref):
        # patch_ref: (TB, S, K) bf16  patch rows (row 0 of each element is zero)
        # w_ref:     (K, E)     bf16  conv weight (resident, constant-indexed)
        # pos_ref:   (S, E)     f32   cls / (pos + bias) slab (resident)
        # out_ref:   (TB, S, E)       full-slab, sublane-aligned stores
        w = w_ref[...]
        pos = pos_ref[...]
        for t in range(TB):  # static unroll; TB is small (<= ~8)
            y = jnp.dot(patch_ref[t], w, preferred_element_type=jnp.float32)
            out_ref[t] = (y + pos).astype(out_ref.dtype)
    return _embed_kernel


def _step_vmem_bytes(tb, S, K, E):
    """Conservative per-grid-step VMEM estimate (double-buffered tiles +
    resident weight/pos, counted x2 for safety)."""
    return (2 * tb * S * K * 2      # patches tile, bf16, double-buffered
            + 2 * tb * S * E * 4    # output tile, f32, double-buffered
            + 2 * K * E * 2         # resident weight (conservative x2)
            + 2 * S * E * 4)        # resident pos slab (conservative x2)


def _pick_batch_tile(B, S, K, E, budget_bytes=40 * 1024 * 1024, max_rows=2048):
    """Largest TB dividing B whose per-step working set fits the VMEM budget
    (sized against v7x's 64 MiB), preferring a grid of length >= 2 so both
    v7x TensorCores get work under 'parallel' dimension semantics."""
    ok = [tb for tb in range(1, B + 1)
          if B % tb == 0 and tb * S <= max_rows
          and _step_vmem_bytes(tb, S, K, E) <= budget_bytes]
    if not ok:
        return 1
    multi = [tb for tb in ok if B // tb >= 2]
    return max(multi) if multi else max(ok)


def embed_layer_forward(x, conv_w, conv_b, pos_embedding, cls_token, patch_size,
                        out_dtype=jnp.float32):
    """x: (B, C, H, W) float32 (NCHW, as in PyTorch).  Returns (B, N+1, E)."""
    B, C, H, W = x.shape
    E = conv_w.shape[0]
    P = patch_size
    nh, nw = H // P, W // P
    N = nh * nw
    K = C * P * P
    S = N + 1

    # --- wrapper glue: extract non-overlapping patches, flattened (C,ph,pw)->K
    # (matches PyTorch Conv2d weight layout (E,C,P,P) flattened over last 3).
    # Cast to bf16 BEFORE the layout shuffle so the materialized patch tensor
    # is half the bytes; the zero cls row is added with a single pad.
    # TODO(synk): fold the patch extraction into the kernel (strided DMA gather
    # over the NCHW input) to remove this materialized (B, S, K) HBM tensor.
    xb = x.astype(jnp.bfloat16)
    patches = xb.reshape(B, C, nh, P, nw, P)
    patches = patches.transpose(0, 2, 4, 1, 3, 5).reshape(B, N, K)
    patches = jnp.pad(patches, ((0, 0), (1, 0), (0, 0)))          # (B, S, K) bf16

    # Fold conv bias into the positional embedding; cls token occupies row 0
    # (the cls row gets neither bias nor positional embedding, matching torch).
    pos_plus = jnp.concatenate(
        [cls_token.reshape(1, E),
         pos_embedding.reshape(N, E) + conv_b.reshape(1, E)],
        axis=0).astype(jnp.float32)                                # (S, E)

    # One-time weight transpose in the wrapper: (E, C, P, P) -> (K, E) bf16.
    w_bf = conv_w.reshape(E, K).T.astype(jnp.bfloat16)

    TB = _pick_batch_tile(B, S, K, E)
    assert B % TB == 0  # every row block starts exactly at a batch boundary
    grid = (B // TB,)
    vmem_limit = int(min(48 * 1024 * 1024,
                         max(16 * 1024 * 1024,
                             2 * _step_vmem_bytes(TB, S, K, E))))

    out = pl.pallas_call(
        _make_embed_kernel(TB),
        out_shape=jax.ShapeDtypeStruct((B, S, E), out_dtype),
        grid_spec=pltpu.PrefetchScalarGridSpec(
            num_scalar_prefetch=0,
            grid=grid,
            in_specs=[
                pl.BlockSpec((TB, S, K), lambda i: (i, 0, 0)),
                pl.BlockSpec((K, E), lambda i: (0, 0)),
                pl.BlockSpec((S, E), lambda i: (0, 0)),
            ],
            out_specs=pl.BlockSpec((TB, S, E), lambda i: (i, 0, 0)),
        ),
        compiler_params=pltpu.CompilerParams(
            dimension_semantics=("parallel",),
            vmem_limit_bytes=vmem_limit),
    )(patches, w_bf, pos_plus)
    return out


def embed_layer_reference(x, conv_w, conv_b, pos_embedding, cls_token, patch_size):
    """Pure-JAX reference mirroring the PyTorch forward."""
    B, C, H, W = x.shape
    E = conv_w.shape[0]
    P = patch_size
    y = lax.conv_general_dilated(
        x, conv_w, window_strides=(P, P), padding="VALID",
        dimension_numbers=("NCHW", "OIHW", "NCHW"),
        precision=lax.Precision.HIGHEST)                  # (B, E, nh, nw)
    y = y + conv_b.reshape(1, E, 1, 1)
    y = y.reshape(B, E, -1).transpose(0, 2, 1)            # (B, N, E)
    y = y + pos_embedding                                 # (1, N, E) broadcast
    cls = jnp.broadcast_to(cls_token, (B, 1, E))
    return jnp.concatenate([cls, y], axis=1)


if __name__ == "__main__":
    # Small, module-consistent shapes.
    n_channels, embed_dim, image_size, patch_size = 4, 32, 16, 4
    B = 2
    N = (image_size // patch_size) ** 2

    key = jax.random.PRNGKey(0)
    k_x, k_w, k_b, k_pos, k_cls = jax.random.split(key, 5)

    x = jax.random.normal(k_x, (B, n_channels, image_size, image_size), jnp.float32)
    conv_w = 0.1 * jax.random.normal(
        k_w, (embed_dim, n_channels, patch_size, patch_size), jnp.float32)
    conv_b = 0.1 * jax.random.normal(k_b, (embed_dim,), jnp.float32)
    # PyTorch inits these to zeros; use small deterministic randoms so the adds
    # are actually exercised.
    pos_embedding = 0.02 * jax.random.normal(k_pos, (1, N, embed_dim), jnp.float32)
    cls_token = 0.02 * jax.random.normal(k_cls, (1, 1, embed_dim), jnp.float32)

    out = embed_layer_forward(x, conv_w, conv_b, pos_embedding, cls_token, patch_size)
    out = jax.block_until_ready(out)
    assert out.shape == (B, N + 1, embed_dim), out.shape

    # Tight check: reference fed the same bf16-rounded matmul inputs
    # (the kernel does bf16 x bf16 with fp32 accumulation on the MXU).
    x_r = x.astype(jnp.bfloat16).astype(jnp.float32)
    w_r = conv_w.astype(jnp.bfloat16).astype(jnp.float32)
    ref_bf = embed_layer_reference(x_r, w_r, conv_b, pos_embedding, cls_token,
                                   patch_size)
    assert jnp.allclose(out, ref_bf, atol=2e-3, rtol=2e-3), \
        float(jnp.abs(out - ref_bf).max())

    # Loose check vs the exact fp32 module semantics (bf16 input rounding is
    # the only source of difference).
    ref = embed_layer_reference(x, conv_w, conv_b, pos_embedding, cls_token,
                                patch_size)
    assert jnp.allclose(out, ref, atol=5e-2, rtol=5e-2), \
        float(jnp.abs(out - ref).max())

    print("KERNEL_OK")
</pallas_src>

<mosaic_0001>
module attributes {stable_mosaic.version = 11 : i64} {
  func.func @_embed_kernel(%arg0: i32, %arg1: memref<1x17x64xbf16, #tpu.memory_space<vmem>>, %arg2: memref<64x32xbf16, #tpu.memory_space<vmem>>, %arg3: memref<17x32xf32, #tpu.memory_space<vmem>>, %arg4: memref<1x17x32xf32, #tpu.memory_space<vmem>>) attributes {dimension_semantics = [#tpu.dimension_semantics<parallel>], iteration_bounds = array<i64: 2>, scalar_prefetch = 0 : i64, scratch_operands = 0 : i64, tpu.core_type = #tpu.core_type<tc>, window_params = [{transform_indices = @transform_0, window_bounds = array<i64: 1, 17, 64>}, {pipeline_mode = #tpu.pipeline_mode<synchronous>, transform_indices = @transform_1, window_bounds = array<i64: 64, 32>}, {pipeline_mode = #tpu.pipeline_mode<synchronous>, transform_indices = @transform_2, window_bounds = array<i64: 17, 32>}, {transform_indices = @transform_3, window_bounds = array<i64: 1, 17, 32>}]} {
    %c0 = arith.constant 0 : index
    %c0_0 = arith.constant 0 : index
    %0 = vector.load %arg2[%c0, %c0_0] : memref<64x32xbf16, #tpu.memory_space<vmem>>, vector<64x32xbf16>
    %c0_1 = arith.constant 0 : index
    %c0_2 = arith.constant 0 : index
    %1 = vector.load %arg3[%c0_1, %c0_2] : memref<17x32xf32, #tpu.memory_space<vmem>>, vector<17x32xf32>
    %c0_3 = arith.constant 0 : index
    %c0_4 = arith.constant 0 : index
    %c0_5 = arith.constant 0 : index
    %2 = vector.load %arg1[%c0_3, %c0_4, %c0_5] : memref<1x17x64xbf16, #tpu.memory_space<vmem>>, vector<1x17x64xbf16>
    %3 = vector.shape_cast %2 : vector<1x17x64xbf16> to vector<17x64xbf16>
    %cst = arith.constant dense<0.000000e+00> : vector<17x32xf32>
    %4 = tpu.matmul %3, %0, %cst {dimension_numbers = #tpu.dot_dimension_numbers<[1], [0], [0], [1], [0, 0, 1, 1], [], []>} : vector<17x64xbf16>, vector<64x32xbf16>, vector<17x32xf32> -> vector<17x32xf32>
    %5 = arith.addf %4, %1 : vector<17x32xf32>
    %c0_6 = arith.constant 0 : index
    %c0_7 = arith.constant 0 : index
    %c0_8 = arith.constant 0 : index
    %6 = vector.load %arg4[%c0_6, %c0_7, %c0_8] : memref<1x17x32xf32, #tpu.memory_space<vmem>>, vector<1x17x32xf32>
    %7 = vector.shape_cast %6 : vector<1x17x32xf32> to vector<17x32xf32>
    %8 = vector.shape_cast %5 : vector<17x32xf32> to vector<1x17x32xf32>
    tpu.vector_store %arg4[%c0_6, %c0_7, %c0_8], %8 {strides = array<i32>} : memref<1x17x32xf32, #tpu.memory_space<vmem>>, vector<1x17x32xf32>,
    return
  }
  func.func @transform_0(%arg0: i32) -> (i32, i32, i32) {
    %c0_i32 = arith.constant 0 : i32
    %c0_i32_0 = arith.constant 0 : i32
    %c0_i32_1 = arith.constant 0 : i32
    return %arg0, %c0_i32, %c0_i32_0 : i32, i32, i32
  }
  func.func @transform_1(%arg0: i32) -> (i32, i32) {
    %c0_i32 = arith.constant 0 : i32
    %c0_i32_0 = arith.constant 0 : i32
    %c0_i32_1 = arith.constant 0 : i32
    return %c0_i32, %c0_i32_0 : i32, i32
  }
  func.func @transform_2(%arg0: i32) -> (i32, i32) {
    %c0_i32 = arith.constant 0 : i32
    %c0_i32_0 = arith.constant 0 : i32
    %c0_i32_1 = arith.constant 0 : i32
    return %c0_i32, %c0_i32_0 : i32, i32
  }
  func.func @transform_3(%arg0: i32) -> (i32, i32, i32) {
    %c0_i32 = arith.constant 0 : i32
    %c0_i32_0 = arith.constant 0 : i32
    %c0_i32_1 = arith.constant 0 : i32
    return %arg0, %c0_i32, %c0_i32_0 : i32, i32, i32
  }
}

</mosaic_0001>

<bundles_post_ra>
// kernel: tpu_custom_call.1
= control target key start
LH: loop header
LB: loop body
LE: loop exit
PB: predicated region body
PF: predicated region fallthrough
CT: control target
= control target key end

     0   :  { %s412_s12 = smov 0   ;;  %s450_s0 = inlined_call_operand.vmem [shape: bf16[2,17,64], index: 0, kind: input, shape index: {}]   ;;  %s451_s1 = inlined_call_operand.vmem [shape: bf16[64,32], index: 1, kind: input, shape index: {}]   ;;  %s452_s2 = inlined_call_operand.vmem [shape: f32[17,32], index: 2, kind: input, shape index: {}]   ;;  %s453_s3 = inlined_call_operand.vmem [shape: f32[2,17,32], index: 3, kind: output, shape index: {}]  }
   0x1 LB: > { %s333_s13 = sadd.s32 4294967295, %s390_s12   ;;  %p337_p0 = scmp.ge.s32.totalorder %s390_s12, 1  ;;  %s390_s12 = sphi %s412_s12, %s13_s12  }
   0x2   : > { %p137_p1 = scmp.lt.s32.totalorder %s390_s12, 3 }
   0x4   : > { %p138_p2 = pnand %p337_p0, %p137_p1 }
   0x5   : > { %v378_v0 = vld [vmem:[%s451_s1] sm:$0xff] (!%p138_p2)   ;;  %p161_p3 = scmp.lt.s32.totalorder (!%p138_p2), %s333_s13, 1  ;;  %v379_v1 = vld [vmem:[%s451_s1 + $0x8] sm:$0xff] (!%p138_p2)   ;;  %v380_v2 = vld [vmem:[%s451_s1 + $0x10] sm:$0xff] (!%p138_p2)   ;;  %vm218_vm0 = vcmask (!%p138_p2), 523264   ;;  %vm276_vm1 = vcmask (!%p138_p2), 253952  }
   0x6   : > { %141 = sbr.rel (%p138_p2) target bundleno = 240 (0xf0), region = 32  ;;  %356 = vmatprep.subr.bf16.mxu0 (!%p138_p2), %v378_v0  ;;  %v381_v3 = vld [vmem:[%s451_s1 + $0x18] sm:$0xff] (!%p138_p2)   ;;  %v182_v6 = vld [vmem:[%s452_s2 + $0x10] sm:$0x1] (!%p138_p2)  ;;  %v180_v7 = vld [vmem:[%s452_s2] sm:$0xff] (!%p138_p2)  ;;  %vm273_vm2 = vcmask (!%p138_p2), 261120  }
   0x7   : > { %357 = vmatpush3.bf16.msra.mxu0 (!%p138_p2), %v378_v0  ;;  %v181_v11 = vld [vmem:[%s452_s2 + $0x8] sm:$0xff] (!%p138_p2) }
   0x8   : > { %358 = vmatprep.subr.bf16.mxu0 (!%p138_p2), %v379_v1 }
   0xb   : > { %359 = vmatpush3.bf16.msra.mxu0 (!%p138_p2), %v379_v1 }
   0xc   : > { %360 = vmatprep.subr.bf16.mxu0 (!%p138_p2), %v380_v2 }
   0xd   : > { %s455_s13 = smov (!%p161_p3, %s333_s13), 1 }
   0xe   : > { %s368_s20 = smul.u32 12, %s455_s13 }
   0xf   : > { %361 = vmatpush3.bf16.msra.mxu0 %v380_v2  ;;  %s369_s26 = smul.u32 24, %s455_s13 }
  0x10   : > { %s165_s23 = scalar_lea.vmem %s450_s0, %s368_s20  ;;  %362 = vmatprep.subr.bf16.mxu0 %v381_v3 }
  0x11   : > { %v382_v4 = vld [vmem:[%s165_s23] sm:$0xff]   ;;  %v383_v5 = vld [vmem:[%s165_s23 + $0x8] ss:$0 sps:$4 sm:$0x11]   ;;  %s170_s6 = scalar_lea.vmem %s453_s3, %s369_s26 }
  0x12   : > { %364 = vmatprep.mubr.msk.bf16.mxu0 %vm218_vm0, %v382_v4 }
  0x13   : > { %363 = vmatpush3.bf16.msra.mxu0 %v381_v3 }
  0x16   : > { %365 = vmatmul.mubr.msk.bf16.vlgmr.msra.gmra.mrb[0].mxu0 %vm218_vm0, %v383_v5 }
  0xe9   : > { %v366_v8 = vpop.f32.mrb[0].mxu0 }
  0xea   : > { %v268_v9 = vadd.f32 %v366_v8, %v182_v6  ;;  %v259_v10 = vpop.f32.mrb[1].mxu0 }
  0xeb   : > { %v260_v12 = vadd.f32 %v259_v10, %v180_v7  ;;  %v367_v13 = vpop.f32.mrb[2].mxu0 }
  0xec   : > { %277 = vst.msk [vmem:[%s170_s6 + $0x10] sm:$0x1] %vm276_vm1, %v268_v9  ;;  %v262_v14 = vpop.f32.mrb[3].mxu0 }
  0xed   : > { %274 = vst.msk [vmem:[%s170_s6] sm:$0xff] %vm273_vm2, %v260_v12  ;;  %v263_v15 = vadd.f32 %v262_v14, %v181_v11 }
  0xef   : > { %275 = vst.msk [vmem:[%s170_s6 + $0x8] sm:$0xff] %vm273_vm2, %v263_v15 }
  0xf0 PF: > { %s13_s12 = sadd.s32 1, %s390_s12  }
  0xf1   : > { %p10_p4 = scmp.ge.s32.totalorder %s13_s12, 4  }
  0xf3   :  { %12 = sbr.rel (!%p10_p4) target bundleno = 1 (0x1), region = 62 }

</bundles_post_ra>
